<compile_context>
chip_gen: v6e
topology: v6e:2x2x1
jax: 0.10.0
libtpu: 0.0.40
codegen_flags: <defaults>
</compile_context>

<pallas_src>
import functools

import jax
import jax.numpy as jnp
from jax.experimental import pallas as pl
from jax.experimental.pallas import tpu as pltpu


_TARGET_BLOCK_BYTES = 2 * 1024 * 1024     # ~2 MiB per input block per grid step
_VMEM_LIMIT_BYTES = 32 * 1024 * 1024      # safe on v5e/v6e (128 MiB) and v7x (64 MiB)


# ----------------------------------------------------------------------------
# Pallas kernels
# ----------------------------------------------------------------------------
def _degrad_latent_kernel(sac_ref, somac_ref, x0_ref, noise_ref, xt_ref):
    """xt = x0 * sqrt_ac[t_b] + noise * (sqrt(1-ac)[t_b] * noising_scale * latent_scale).

    x0/noise/xt blocks are lane-dense (bt, L*D); the per-batch-row scales arrive
    as (bt, 1) VMEM columns (pre-combined in the wrapper) and lane-broadcast.
    """
    xt_ref[...] = x0_ref[...] * sac_ref[...] + noise_ref[...] * somac_ref[...]


def _latent_loss_kernel(pred_ref, gt_ref, mask_ref, weight_ref, out_ref,
                        num_acc, den_acc, *, d_model, l_total, l_tile):
    """Chunked masked latent MSE.

    Per (batch_tile, L_chunk) step: accumulate sum_{L,D}(diff^2 * mask) and
    sum_L(mask) into f32 scratch.  Finalize (last L chunk): divide by D and by
    (mask_sum + 1e-6), multiply by the per-batch weight, store lane-dense.
    """
    l_idx = pl.program_id(1)

    @pl.when(l_idx == 0)
    def _():
        num_acc[...] = jnp.zeros_like(num_acc)
        den_acc[...] = jnp.zeros_like(den_acc)

    m = mask_ref[...].astype(jnp.float32)                               # (bt, lt, 1)
    d = pred_ref[...].astype(jnp.float32) - gt_ref[...].astype(jnp.float32)
    sq = d * d                                                          # (bt, lt, D)

    if l_total % l_tile != 0:
        # Guard the ragged last L chunk (OOB block reads contain garbage).
        l0 = l_idx * l_tile
        iota = jax.lax.broadcasted_iota(jnp.int32, (m.shape[0], l_tile, 1), 1)
        valid = (l0 + iota) < l_total                                   # (bt, lt, 1)
        m = jnp.where(valid, m, 0.0)
        sq = jnp.where(valid, sq, 0.0)

    # Fused masked reduction: L stays on the sublane axis throughout (no relayout).
    contrib = sq * m                                                    # (bt, lt, D)
    num_acc[...] += jnp.sum(jnp.sum(contrib, axis=2, keepdims=True), axis=1)  # (bt, 1)
    den_acc[...] += jnp.sum(m, axis=1)                                  # (bt, 1)

    @pl.when(l_idx == pl.num_programs(1) - 1)
    def _():
        num_mean = num_acc[...] * (1.0 / float(d_model))                # mean over D
        loss = weight_ref[...] * num_mean / (den_acc[...] + 1e-6)       # (bt, 1)
        out_ref[...] = jnp.broadcast_to(loss, out_ref.shape)            # lane-dense store


# ----------------------------------------------------------------------------
# DDPM module (schedule buffers + forward glue in plain JAX, hot path in Pallas)
# ----------------------------------------------------------------------------
class DDPMPallas:
    def __init__(self, *, T=64, beta_start=1e-4, beta_end=0.02,
                 in_channels=32, vocab_size=40, latent_scale=1.0,
                 loss_weight=None):
        self.T = T
        self.in_channels = in_channels
        self.latent_scale = float(latent_scale)
        self.loss_weight = loss_weight or {"latent_loss": 1.0}

        # --- diffusion schedule buffers (identical math to the torch __init__) ---
        betas = jnp.linspace(beta_start, beta_end, T, dtype=jnp.float32)
        alphas = 1.0 - betas
        alphas_cumprod = jnp.cumprod(alphas)
        alphas_cumprod_prev = jnp.concatenate(
            [jnp.ones((1,), jnp.float32), alphas_cumprod[:-1]])
        self.betas = betas
        self.alphas_cumprod = alphas_cumprod
        self.alphas_cumprod_prev = alphas_cumprod_prev
        self.sqrt_alphas_cumprod = jnp.sqrt(alphas_cumprod)
        self.sqrt_one_minus_alphas_cumprod = jnp.sqrt(1.0 - alphas_cumprod)
        posterior_variance = betas * (1.0 - alphas_cumprod_prev) / (1.0 - alphas_cumprod)
        posterior_variance = jnp.maximum(posterior_variance, 1e-20)  # stack+max(dim=0)
        self.posterior_log_variance_clipped = jnp.log(posterior_variance)
        self.posterior_mean_coef1 = (betas * jnp.sqrt(alphas_cumprod_prev)
                                     / (1.0 - alphas_cumprod))
        self.posterior_mean_coef2 = ((1.0 - alphas_cumprod_prev) * jnp.sqrt(alphas)
                                     / (1.0 - alphas_cumprod))

        # --- x0_pred_net.ldm.x_embedder.wtb : deterministic embedding table ---
        self.wtb = (jax.random.normal(jax.random.PRNGKey(1),
                                      (vocab_size, in_channels), jnp.float32) * 0.02)

    # ---------------- q_sample / degrad_latent (Pallas) ----------------
    def degrad_latent(self, latent_0, t, noise, noising_scale=1.0):
        B, L, D = latent_0.shape
        LD = L * D
        dtype = latent_0.dtype
        itemsize = jnp.dtype(dtype).itemsize

        # Per-batch scalars gathered at t; noising_scale * latent_scale folded in once.
        sac = self.sqrt_alphas_cumprod[t].astype(dtype).reshape(B, 1)
        somac = (self.sqrt_one_minus_alphas_cumprod[t]
                 * (float(noising_scale) * self.latent_scale)).astype(dtype).reshape(B, 1)

        # Lane-dense view: trailing axis L*D (>=128-multiple at realistic sizes).
        x0_2d = latent_0.reshape(B, LD)
        noise_2d = noise.reshape(B, LD)

        # Big batch-row tiles (~2 MiB per input block); bt multiple of 8 when < B.
        bt = int(max(1, _TARGET_BLOCK_BYTES // max(LD * itemsize, 1)))
        if bt >= B:
            bt = B
        else:
            bt = min(B, max(8, (bt // 8) * 8))
        grid = (pl.cdiv(B, bt),)

        out2d = pl.pallas_call(
            _degrad_latent_kernel,
            out_shape=jax.ShapeDtypeStruct((B, LD), dtype),
            grid=grid,
            in_specs=[
                pl.BlockSpec((bt, 1), lambda i: (i, 0)),    # sqrt_ac[t]           (bt, 1)
                pl.BlockSpec((bt, 1), lambda i: (i, 0)),    # scaled sqrt(1-ac)[t] (bt, 1)
                pl.BlockSpec((bt, LD), lambda i: (i, 0)),   # latent_0             (bt, L*D)
                pl.BlockSpec((bt, LD), lambda i: (i, 0)),   # noise                (bt, L*D)
            ],
            out_specs=pl.BlockSpec((bt, LD), lambda i: (i, 0)),
            compiler_params=pltpu.CompilerParams(
                dimension_semantics=("parallel",),
                vmem_limit_bytes=_VMEM_LIMIT_BYTES),
        )(sac, somac, x0_2d, noise_2d)
        return out2d.reshape(B, L, D)

    def q_sample(self, x0_dict, t, noise, noising_scale=1.0):
        xt_dict = {}
        if "latent_rep" in x0_dict:
            xt_dict["latent_rep"] = self.degrad_latent(
                x0_dict["latent_rep"], t, noise, noising_scale=noising_scale)
        return xt_dict

    # ---------------- latent loss (Pallas chunked reduction) ----------------
    # TODO(synk): exact `latent_loss` definition lives outside the provided module;
    # this implements the standard protdiff masked, per-dim-averaged MSE with a
    # per-batch weight.
    def latent_loss(self, pred_latent, gt_latent, single_mask, weight_loss):
        B, L, D = pred_latent.shape
        itemsize = jnp.dtype(pred_latent.dtype).itemsize

        # Batch tile: whole batch when small, else 8-row tiles (gives >1 "parallel"
        # grid blocks on v7x's two TensorCores for realistic batch sizes).
        bt = B if B <= 8 else 8
        nb = pl.cdiv(B, bt)

        # L chunk: full L if a (bt, L, D) block fits the budget, else a multiple
        # of 128 (satisfies both the pred sublane and the mask constraints).
        if bt * L * D * itemsize <= _TARGET_BLOCK_BYTES:
            lt = L
        else:
            lt = max(128, (_TARGET_BLOCK_BYTES // (bt * D * itemsize)) // 128 * 128)
            lt = min(lt, L)
        nl = pl.cdiv(L, lt)

        mask3 = single_mask.astype(jnp.float32).reshape(B, L, 1)
        w2 = weight_loss.astype(jnp.float32).reshape(B, 1)

        kernel = functools.partial(_latent_loss_kernel,
                                   d_model=D, l_total=L, l_tile=lt)
        out = pl.pallas_call(
            kernel,
            out_shape=jax.ShapeDtypeStruct((B, 128), jnp.float32),
            grid=(nb, nl),
            in_specs=[
                pl.BlockSpec((bt, lt, D), lambda b, l: (b, l, 0)),   # pred
                pl.BlockSpec((bt, lt, D), lambda b, l: (b, l, 0)),   # gt
                pl.BlockSpec((bt, lt, 1), lambda b, l: (b, l, 0)),   # mask
                pl.BlockSpec((bt, 1), lambda b, l: (b, 0)),          # weight
            ],
            out_specs=pl.BlockSpec((bt, 128), lambda b, l: (b, 0)),  # lane-dense out
            scratch_shapes=[pltpu.VMEM((bt, 1), jnp.float32),        # num accumulator
                            pltpu.VMEM((bt, 1), jnp.float32)],       # mask-count acc
            compiler_params=pltpu.CompilerParams(
                dimension_semantics=("parallel", "arbitrary"),
                vmem_limit_bytes=_VMEM_LIMIT_BYTES),
        )(pred_latent, gt_latent, mask3, w2)
        return out[:, 0]

    # ---------------- forward ----------------
    def forward(self, batch, key, pred_latent=None, noising_scale=1.0):
        gt_pos = batch["gt_backbone_pos"]
        B, L = gt_pos.shape[:2]

        # latent_rep_gt = x_embedder.wtb(str_code)   (embedding gather; plain-JAX glue)
        latent_rep_gt = jnp.take(self.wtb, batch["str_code"], axis=0)       # [B, L, D]
        batch["latent_rep_gt"] = latent_rep_gt

        # make_mask(len, B, L, batch, dtype) -- built in f32 so masked counts stay exact.
        single_mask = (jnp.arange(L)[None, :] < batch["len"][:, None]).astype(jnp.float32)
        batch["single_mask"] = single_mask
        loss_mask = jnp.ones((B,), jnp.float32)
        batch["loss_mask"] = loss_mask

        key_t, key_noise = jax.random.split(key)
        t = jax.random.randint(key_t, (B,), 0, self.T)
        batch["t"] = t
        batch["sqrt_alphas_cumprod"] = self.sqrt_alphas_cumprod[t]

        x0_dict = {"latent_rep": latent_rep_gt}
        batch["x0_dict"] = x0_dict

        # TODO(synk): self-conditioning branch needs LatentDiffModelSelfCond
        # (x0_pred_net), which is not defined in the reference module; this path
        # corresponds to global_config.self_condition = False.

        noise = jax.random.normal(key_noise, latent_rep_gt.shape, latent_rep_gt.dtype)
        xt_dict = self.q_sample(x0_dict, t, noise, noising_scale=noising_scale)
        batch["xt_dict"] = xt_dict

        # TODO(synk): pred_latent should be self.x0_pred_net(batch, ...)['pred_latent'];
        # the predictor network is external, so it is accepted as an input here.
        if pred_latent is None:
            pred_latent = xt_dict["latent_rep"]

        # weight_loss: global_config.weight_loss defaults to False -> ones_like
        weight_loss = jnp.ones_like(batch["sqrt_alphas_cumprod"])

        latent_l = self.latent_loss(pred_latent, x0_dict["latent_rep"],
                                    single_mask, weight_loss)               # [B]

        # mask_loss + weighted sum of means (l2_distance / fape branches need the
        # external predictor outputs and are skipped -- see TODOs above).
        losses_dict = {"latent_loss": latent_l * loss_mask}
        loss = sum(jnp.mean(losses_dict[k]) * w
                   for k, w in self.loss_weight.items() if k in losses_dict)
        losses_dict["loss"] = loss
        losses_dict = {k: v.astype(jnp.float32) for k, v in losses_dict.items()}  # loss_dict_fp32
        return losses_dict, None


# ----------------------------------------------------------------------------
# demo + correctness checks against pure-JAX references
# ----------------------------------------------------------------------------
if __name__ == "__main__":
    B, L, D, T, VOCAB = 2, 8, 32, 64, 40

    ddpm = DDPMPallas(T=T, beta_start=1e-4, beta_end=0.02,
                      in_channels=D, vocab_size=VOCAB, latent_scale=1.0)

    key = jax.random.PRNGKey(0)
    k_code, k_pos, k_t, k_lat, k_noise, k_fwd = jax.random.split(key, 6)

    batch = {
        "str_code": jax.random.randint(k_code, (B, L), 0, VOCAB),
        "gt_backbone_pos": jax.random.normal(k_pos, (B, L, 4, 3), jnp.float32),
        "len": jnp.array([L, L - 2], jnp.int32),
        "chain_idx": jnp.zeros((B, L), jnp.int32),
    }

    # --- standalone kernel checks vs pure-JAX references ---
    latent0 = jax.random.normal(k_lat, (B, L, D), jnp.float32)
    noise = jax.random.normal(k_noise, (B, L, D), jnp.float32)
    t = jax.random.randint(k_t, (B,), 0, T)

    xt = ddpm.degrad_latent(latent0, t, noise, noising_scale=1.0)
    xt_ref = (latent0 * ddpm.sqrt_alphas_cumprod[t][:, None, None]
              + noise * ddpm.sqrt_one_minus_alphas_cumprod[t][:, None, None]
              * 1.0 * ddpm.latent_scale)
    jax.block_until_ready(xt)
    assert bool(jnp.allclose(xt, xt_ref, rtol=1e-5, atol=1e-5)), "degrad mismatch"

    mask = (jnp.arange(L)[None, :] < batch["len"][:, None]).astype(jnp.float32)
    w = jnp.ones((B,), jnp.float32)
    ll = ddpm.latent_loss(xt, latent0, mask, w)
    diff2 = (xt - latent0) ** 2
    per_res = jnp.mean(diff2, axis=-1)
    ll_ref = w * jnp.sum(per_res * mask, axis=-1) / (jnp.sum(mask, axis=-1) + 1e-6)
    jax.block_until_ready(ll)
    assert bool(jnp.allclose(ll, ll_ref, rtol=1e-5, atol=1e-6)), "latent_loss mismatch"

    # --- full forward pass ---
    losses_dict, _ = ddpm.forward(batch, key=k_fwd)
    jax.block_until_ready(losses_dict["loss"])

    assert losses_dict["loss"].dtype == jnp.float32
    assert losses_dict["latent_loss"].shape == (B,)
    assert batch["xt_dict"]["latent_rep"].shape == (B, L, D)

    print("KERNEL_OK")
</pallas_src>

<mosaic_0001>
module attributes {stable_mosaic.version = 11 : i64} {
  func.func @_degrad_latent_kernel(%arg0: i32, %arg1: memref<2x1xf32, #tpu.memory_space<vmem>>, %arg2: memref<2x1xf32, #tpu.memory_space<vmem>>, %arg3: memref<2x256xf32, #tpu.memory_space<vmem>>, %arg4: memref<2x256xf32, #tpu.memory_space<vmem>>, %arg5: memref<2x256xf32, #tpu.memory_space<vmem>>) attributes {dimension_semantics = [#tpu.dimension_semantics<parallel>], iteration_bounds = array<i64: 1>, scalar_prefetch = 0 : i64, scratch_operands = 0 : i64, tpu.core_type = #tpu.core_type<tc>, window_params = [{transform_indices = @transform_0, window_bounds = array<i64: 2, 1>}, {transform_indices = @transform_1, window_bounds = array<i64: 2, 1>}, {transform_indices = @transform_2, window_bounds = array<i64: 2, 256>}, {transform_indices = @transform_3, window_bounds = array<i64: 2, 256>}, {transform_indices = @transform_4, window_bounds = array<i64: 2, 256>}]} {
    %c0 = arith.constant 0 : index
    %c0_0 = arith.constant 0 : index
    %0 = vector.load %arg3[%c0, %c0_0] : memref<2x256xf32, #tpu.memory_space<vmem>>, vector<2x256xf32>
    %c0_1 = arith.constant 0 : index
    %c0_2 = arith.constant 0 : index
    %1 = vector.load %arg1[%c0_1, %c0_2] : memref<2x1xf32, #tpu.memory_space<vmem>>, vector<2x1xf32>
    %2 = vector.broadcast %1 : vector<2x1xf32> to vector<2x256xf32>
    %3 = arith.mulf %0, %2 : vector<2x256xf32>
    %c0_3 = arith.constant 0 : index
    %c0_4 = arith.constant 0 : index
    %4 = vector.load %arg4[%c0_3, %c0_4] : memref<2x256xf32, #tpu.memory_space<vmem>>, vector<2x256xf32>
    %c0_5 = arith.constant 0 : index
    %c0_6 = arith.constant 0 : index
    %5 = vector.load %arg2[%c0_5, %c0_6] : memref<2x1xf32, #tpu.memory_space<vmem>>, vector<2x1xf32>
    %6 = vector.broadcast %5 : vector<2x1xf32> to vector<2x256xf32>
    %7 = arith.mulf %4, %6 : vector<2x256xf32>
    %8 = arith.addf %3, %7 : vector<2x256xf32>
    %c0_7 = arith.constant 0 : index
    %c0_8 = arith.constant 0 : index
    %9 = vector.load %arg5[%c0_7, %c0_8] : memref<2x256xf32, #tpu.memory_space<vmem>>, vector<2x256xf32>
    tpu.vector_store %arg5[%c0_7, %c0_8], %8 {strides = array<i32>} : memref<2x256xf32, #tpu.memory_space<vmem>>, vector<2x256xf32>,
    return
  }
  func.func @transform_0(%arg0: i32) -> (i32, i32) {
    %c0_i32 = arith.constant 0 : i32
    %c0_i32_0 = arith.constant 0 : i32
    return %arg0, %c0_i32 : i32, i32
  }
  func.func @transform_1(%arg0: i32) -> (i32, i32) {
    %c0_i32 = arith.constant 0 : i32
    %c0_i32_0 = arith.constant 0 : i32
    return %arg0, %c0_i32 : i32, i32
  }
  func.func @transform_2(%arg0: i32) -> (i32, i32) {
    %c0_i32 = arith.constant 0 : i32
    %c0_i32_0 = arith.constant 0 : i32
    return %arg0, %c0_i32 : i32, i32
  }
  func.func @transform_3(%arg0: i32) -> (i32, i32) {
    %c0_i32 = arith.constant 0 : i32
    %c0_i32_0 = arith.constant 0 : i32
    return %arg0, %c0_i32 : i32, i32
  }
  func.func @transform_4(%arg0: i32) -> (i32, i32) {
    %c0_i32 = arith.constant 0 : i32
    %c0_i32_0 = arith.constant 0 : i32
    return %arg0, %c0_i32 : i32, i32
  }
}

</mosaic_0001>

<bundles_post_ra>
// kernel: tpu_custom_call.1
= control target key start
LH: loop header
LB: loop body
LE: loop exit
PB: predicated region body
PF: predicated region fallthrough
CT: control target
= control target key end

     0   :  { %v90_v1 = vmov 0   ;;  %s133_s0 = inlined_call_operand.vmem [shape: f32[2,1], index: 0, kind: input, shape index: {}]   ;;  %s134_s1 = inlined_call_operand.vmem [shape: f32[2,1], index: 1, kind: input, shape index: {}]   ;;  %s135_s2 = inlined_call_operand.vmem [shape: f32[2,256], index: 2, kind: input, shape index: {}]   ;;  %s136_s3 = inlined_call_operand.vmem [shape: f32[2,256], index: 3, kind: input, shape index: {}]   ;;  %s137_s4 = inlined_call_operand.hbm [shape: f32[2,256], index: 4, kind: output, shape index: {}]  }
   0x1   :  { %v19_v0 = vld [vmem:[%s133_s0] sm:$0x3]  ;;  %67 = vset.pattern.permute.xlu0 %v90_v1 }
   0x2   :  { %22 = vperm.xlu0 %67, %v19_v0  }
   0x3   :  { %9 = vsyncpa [#allocation3], 0  ;;  %v34_v2 = vld [vmem:[%s134_s1] sm:$0x3]  ;;  %v91_v3 = vmov 269488144   ;;  %v27_v5 = vlaneseq }
   0x4   :  { %v25_v4 = vunpack.c.l.s4 %v91_v3  ;;  %v18_v11 = vld [vmem:[%s135_s2] sm:$0xf]  ;;  %s92_s1 = smov [#allocation2]  }
   0x5   :  { %v28_v7 = vshrl.u32 %v27_v5, 7  ;;  %v33_v12 = vld [vmem:[%s136_s3] sm:$0xf]  ;;  %s56_s22 = sshll.u32 %s92_s1, 4  ;;  %s57_s22 = int_to_ptr.vmem [resolvable:$true] %s56_s22 }
   0x6   :  { %37 = vperm.xlu0 %67, %v34_v2   ;;  %v26_v6 = vunpack.c.0.s8 %v25_v4  ;;  %s68_s23 = scalar_lea.vmem %s57_s22, 64  ;;  %p73_p1 = scmp.lt.s32.totalorder %s57_s22, %s57_s22 }
   0x7   :  { %p69_p0 = scmp.ne.s32.totalorder %s57_s22, %s68_s23  ;;  %p74_p2 = scmp.lt.s32.totalorder %s68_s23, %s68_s23 }
   0x8   :  { %v29_v8 = vsub.s32 %v26_v6, %v28_v7 }
   0x9   :  { %p75_p3 = por %p74_p2, %p73_p1 }
   0xb   :  { %p76_p4 = pnand %p75_p3, %p69_p0 }
  0x7d   :  { %v23_v9 = vpop.permute.xlu0 %22 }
  0x7e   :  { %v30_v10 = vrot.slane %v23_v9, %v29_v8 }
  0x80   :  { %v32_v15 = vmul.f32 %v30_v10, %v18_v11 }
  0x81   :  { %v38_v13 = vpop.permute.xlu0 %37 }
  0x82   :  { %v45_v14 = vrot.slane %v38_v13, %v29_v8 }
  0x84   :  { %v47_v16 = vmul.f32 %v45_v14, %v33_v12 }
  0x86   :  { %v48_v17 = vadd.f32 %v47_v16, %v32_v15 }
  0x88   :  { %49 = vst [vmem:[#allocation2] sm:$0xf] %v48_v17 }
  0x89   :  { %79 = shalt.err (!%p76_p4)
}
  0x8a   :  { %59 = dma.vmem_to_hbm [thread:$0]  %s57_s22, 64, %s137_s4, [#allocation3]  }
  0x8b   :  { %88 = dma.done.wait [#allocation3], 64  }
  0x8c   :  { %89 = vsyncadd [#allocation3], 4294967232 }
  0x8d   :  { %63 = vsyncpa [#allocation3], 1 }

</bundles_post_ra>
